<compile_context>
chip_gen: v7x
topology: tpu7x:2x2x1
jax: 0.10.0
libtpu: 0.0.40
codegen_flags: <defaults>
</compile_context>

<pallas_src>
import functools

import jax
import jax.numpy as jnp
import numpy as np
from jax.experimental import pallas as pl
from jax.experimental.pallas import tpu as pltpu

_LANE = 128
_VMEM_SOFT_CAP = 40 * 1024 * 1024   # conservative across v5e / v6e / v7x


def _round_up(x, m):
    return (x + m - 1) // m * m


# ---------------------------------------------------------------------------
# Single-pass kernel: one (C, H*W) image per grid step.
# ---------------------------------------------------------------------------
def _lc_se_fused_kernel(x_ref, w1_ref, b1_ref, w2_ref, b2_ref, o_ref, *, inv_hw):
    # x_ref : (1, C, HWp)  channels on sublanes, H*W lane-dense
    # w1_ref: (C, Cr) f32  squeeze conv weight, stored [in, out]
    # b1_ref: (1, Cr) f32
    # w2_ref: (C, Cr) f32  excite conv weight, native [out, in]
    # b2_ref: (C, 1)  f32
    # Global average pool: f32 accumulation, no live f32 copy of x.
    pooled = jnp.sum(x_ref[0], axis=1, keepdims=True, dtype=jnp.float32) * inv_hw  # (C,1)

    # 1x1 conv C->Cr (+bias) + ReLU  -- tiny contraction: VPU, not MXU.
    z1 = jnp.sum(w1_ref[...] * pooled, axis=0, keepdims=True)                      # (1,Cr)
    h1 = jnp.maximum(z1 + b1_ref[...], 0.0)

    # 1x1 conv Cr->C (+bias) + SiLU (exp + reciprocal on the EUP).
    z2 = jnp.sum(w2_ref[...] * h1, axis=1, keepdims=True) + b2_ref[...]            # (C,1)
    gate = z2 * pl.reciprocal(1.0 + jnp.exp(-z2), approx=True)

    # identity * gate: re-read x in native dtype, multiply without promotion.
    o_ref[0] = x_ref[0] * gate.astype(o_ref.dtype)


# ---------------------------------------------------------------------------
# Two-pass fallback (bounded VMEM): pool+gate kernel, then HW-tiled scale.
# ---------------------------------------------------------------------------
def _lc_se_pool_gate_kernel(x_ref, w1_ref, b1_ref, w2_ref, b2_ref, gate_ref,
                            acc_ref, *, inv_hw):
    k = pl.program_id(1)

    @pl.when(k == 0)
    def _():
        acc_ref[...] = jnp.zeros_like(acc_ref)

    acc_ref[...] += jnp.sum(x_ref[0], axis=1, keepdims=True, dtype=jnp.float32)

    @pl.when(k == pl.num_programs(1) - 1)
    def _():
        pooled = acc_ref[...] * inv_hw                                             # (C,1)
        z1 = jnp.sum(w1_ref[...] * pooled, axis=0, keepdims=True)                  # (1,Cr)
        h1 = jnp.maximum(z1 + b1_ref[...], 0.0)
        z2 = jnp.sum(w2_ref[...] * h1, axis=1, keepdims=True) + b2_ref[...]        # (C,1)
        gate_ref[0] = z2 * pl.reciprocal(1.0 + jnp.exp(-z2), approx=True)


def _lc_se_scale_kernel(x_ref, gate_ref, o_ref):
    o_ref[0] = x_ref[0] * gate_ref[0].astype(o_ref.dtype)


# ---------------------------------------------------------------------------
# Wrapper
# ---------------------------------------------------------------------------
def lc_se_module_pallas(x_nchw, conv1_w, conv1_b, conv2_w, conv2_b,
                        *, force_two_pass=False, max_tile_hw=None):
    """x_nchw: (N, C, H, W).
    conv1_w: (Cr, C, 1, 1), conv1_b: (Cr,)  -- squeeze conv.
    conv2_w: (C, Cr, 1, 1), conv2_b: (C,)   -- excite conv."""
    N, C, H, W = x_nchw.shape
    Cr = conv1_w.shape[0]
    HW = H * W
    itemsize = x_nchw.dtype.itemsize

    # Free contiguous reshape + lane-dense padding of H*W to a multiple of 128
    # (unmasked vst on the store-bound epilogue; zero-pad is harmless because
    # inv_hw below uses the true H*W).
    HWp = _round_up(HW, _LANE)
    x_flat = x_nchw.reshape(N, C, HW)
    if HWp != HW:
        x_flat = jnp.pad(x_flat, ((0, 0), (0, 0), (0, HWp - HW)))

    # One-time weight relayout + f32 cast, hoisted out of the kernel.
    w1_t = jnp.transpose(conv1_w[:, :, 0, 0], (1, 0)).astype(jnp.float32)   # (C, Cr)
    b1_r = conv1_b.reshape(1, Cr).astype(jnp.float32)
    w2_m = conv2_w[:, :, 0, 0].astype(jnp.float32)                          # (C, Cr)
    b2_r = conv2_b.reshape(C, 1).astype(jnp.float32)

    inv_hw = 1.0 / float(HW)

    weights_bytes = (2 * C * Cr + Cr + C) * 4
    fused_bytes = 4 * C * HWp * itemsize        # 2x input + 2x output (double-buffered)

    cost = pl.CostEstimate(
        flops=int(2 * N * C * HW + 4 * N * C * Cr),
        transcendentals=int(N * C),
        bytes_accessed=int(2 * N * C * HW * itemsize))

    use_fused = (not force_two_pass) and (fused_bytes + weights_bytes <= _VMEM_SOFT_CAP)

    if use_fused:
        vmem_limit = int(min(max(fused_bytes + weights_bytes + (4 << 20), 16 << 20),
                             56 << 20))
        out_flat = pl.pallas_call(
            functools.partial(_lc_se_fused_kernel, inv_hw=inv_hw),
            out_shape=jax.ShapeDtypeStruct((N, C, HWp), x_nchw.dtype),
            grid_spec=pltpu.PrefetchScalarGridSpec(
                num_scalar_prefetch=0,
                grid=(N,),
                in_specs=[
                    pl.BlockSpec((1, C, HWp), lambda n: (n, 0, 0)),
                    pl.BlockSpec((C, Cr), lambda n: (0, 0)),
                    pl.BlockSpec((1, Cr), lambda n: (0, 0)),
                    pl.BlockSpec((C, Cr), lambda n: (0, 0)),
                    pl.BlockSpec((C, 1), lambda n: (0, 0)),
                ],
                out_specs=pl.BlockSpec((1, C, HWp), lambda n: (n, 0, 0)),
            ),
            compiler_params=pltpu.CompilerParams(
                dimension_semantics=("parallel",),
                vmem_limit_bytes=vmem_limit),
            cost_estimate=cost,
        )(x_flat, w1_t, b1_r, w2_m, b2_r)
    else:
        # ---- Two-pass: pool+gate (reduction over HW tiles) then scale. ----
        # Largest lane-dense HW tile whose double-buffered in+out fits budget.
        budget_tile = max(_LANE,
                          ((_VMEM_SOFT_CAP - weights_bytes) // (4 * C * itemsize))
                          // _LANE * _LANE)
        # TODO(synk): if C alone is so large that even a 128-lane tile blows
        # VMEM, a channel-tiled variant would be needed.
        tile_hw = int(min(budget_tile, HWp))
        if max_tile_hw is not None:
            tile_hw = int(min(tile_hw, max(_round_up(max_tile_hw, _LANE), _LANE)))
        tile_hw = max(tile_hw, _LANE)

        HWt = _round_up(HWp, tile_hw)
        if HWt != x_flat.shape[-1]:
            x_flat = jnp.pad(x_flat, ((0, 0), (0, 0), (0, HWt - x_flat.shape[-1])))
        n_hw = HWt // tile_hw

        vmem_limit = int(min(max(4 * C * tile_hw * itemsize + weights_bytes + (4 << 20),
                                 16 << 20), 56 << 20))

        gate = pl.pallas_call(
            functools.partial(_lc_se_pool_gate_kernel, inv_hw=inv_hw),
            out_shape=jax.ShapeDtypeStruct((N, C, 1), jnp.float32),
            grid_spec=pltpu.PrefetchScalarGridSpec(
                num_scalar_prefetch=0,
                grid=(N, n_hw),
                in_specs=[
                    pl.BlockSpec((1, C, tile_hw), lambda n, k: (n, 0, k)),
                    pl.BlockSpec((C, Cr), lambda n, k: (0, 0)),
                    pl.BlockSpec((1, Cr), lambda n, k: (0, 0)),
                    pl.BlockSpec((C, Cr), lambda n, k: (0, 0)),
                    pl.BlockSpec((C, 1), lambda n, k: (0, 0)),
                ],
                out_specs=pl.BlockSpec((1, C, 1), lambda n, k: (n, 0, 0)),
                scratch_shapes=[pltpu.VMEM((C, 1), jnp.float32)],
            ),
            compiler_params=pltpu.CompilerParams(
                dimension_semantics=("parallel", "arbitrary"),
                vmem_limit_bytes=vmem_limit),
        )(x_flat, w1_t, b1_r, w2_m, b2_r)

        out_flat = pl.pallas_call(
            _lc_se_scale_kernel,
            out_shape=jax.ShapeDtypeStruct((N, C, HWt), x_nchw.dtype),
            grid_spec=pltpu.PrefetchScalarGridSpec(
                num_scalar_prefetch=0,
                grid=(N, n_hw),
                in_specs=[
                    pl.BlockSpec((1, C, tile_hw), lambda n, k: (n, 0, k)),
                    pl.BlockSpec((1, C, 1), lambda n, k: (n, 0, 0)),
                ],
                out_specs=pl.BlockSpec((1, C, tile_hw), lambda n, k: (n, 0, k)),
            ),
            compiler_params=pltpu.CompilerParams(
                dimension_semantics=("parallel", "parallel"),
                vmem_limit_bytes=vmem_limit),
            cost_estimate=cost,
        )(x_flat, gate)

    if out_flat.shape[-1] != HW:
        out_flat = out_flat[:, :, :HW]
    return out_flat.reshape(N, C, H, W)


def _reference(x, conv1_w, conv1_b, conv2_w, conv2_b):
    # Pure-JAX mirror of PyTorch LC_SEModule.forward (eval semantics).
    p = jnp.mean(x, axis=(2, 3), keepdims=True)                        # (N,C,1,1)
    h = jnp.einsum('oc,ncij->noij', conv1_w[:, :, 0, 0], p)
    h = h + conv1_b[None, :, None, None]
    h = jnp.maximum(h, 0.0)
    g = jnp.einsum('oc,ncij->noij', conv2_w[:, :, 0, 0], h)
    g = g + conv2_b[None, :, None, None]
    g = g * jax.nn.sigmoid(g)                                          # SiLU
    return x * g


if __name__ == "__main__":
    key = jax.random.PRNGKey(0)
    N, C, H, W = 2, 16, 16, 16
    reduction = 4
    Cr = C // reduction

    k_x, k_w1, k_b1, k_w2, k_b2 = jax.random.split(key, 5)

    x = jax.random.normal(k_x, (N, C, H, W), jnp.float32)
    conv1_w = jax.random.normal(k_w1, (Cr, C, 1, 1), jnp.float32) * 0.3
    conv1_b = 0.1 * jax.random.normal(k_b1, (Cr,), jnp.float32)
    conv2_w = jax.random.normal(k_w2, (C, Cr, 1, 1), jnp.float32) * 0.3
    conv2_b = 0.1 * jax.random.normal(k_b2, (C,), jnp.float32)

    ref = _reference(x, conv1_w, conv1_b, conv2_w, conv2_b)

    # Single-pass fused path (default for shapes that fit VMEM).
    out = jax.block_until_ready(
        lc_se_module_pallas(x, conv1_w, conv1_b, conv2_w, conv2_b))
    np.testing.assert_allclose(np.asarray(out), np.asarray(ref),
                               rtol=2e-3, atol=2e-3)

    # Also exercise the VMEM-bounded two-pass (pool+gate / scale) fallback.
    out2 = jax.block_until_ready(
        lc_se_module_pallas(x, conv1_w, conv1_b, conv2_w, conv2_b,
                            force_two_pass=True, max_tile_hw=128))
    np.testing.assert_allclose(np.asarray(out2), np.asarray(ref),
                               rtol=2e-3, atol=2e-3)

    print("KERNEL_OK")
</pallas_src>

<mosaic_0001>
module attributes {stable_mosaic.version = 11 : i64} {
  func.func @_lc_se_fused_kernel(%arg0: i32, %arg1: memref<1x16x256xf32, #tpu.memory_space<vmem>>, %arg2: memref<16x4xf32, #tpu.memory_space<vmem>>, %arg3: memref<1x4xf32, #tpu.memory_space<vmem>>, %arg4: memref<16x4xf32, #tpu.memory_space<vmem>>, %arg5: memref<16x1xf32, #tpu.memory_space<vmem>>, %arg6: memref<1x16x256xf32, #tpu.memory_space<vmem>>) attributes {dimension_semantics = [#tpu.dimension_semantics<parallel>], iteration_bounds = array<i64: 2>, scalar_prefetch = 0 : i64, scratch_operands = 0 : i64, tpu.core_type = #tpu.core_type<tc>, window_params = [{transform_indices = @transform_0, window_bounds = array<i64: 1, 16, 256>}, {pipeline_mode = #tpu.pipeline_mode<synchronous>, transform_indices = @transform_1, window_bounds = array<i64: 16, 4>}, {pipeline_mode = #tpu.pipeline_mode<synchronous>, transform_indices = @transform_2, window_bounds = array<i64: 1, 4>}, {pipeline_mode = #tpu.pipeline_mode<synchronous>, transform_indices = @transform_3, window_bounds = array<i64: 16, 4>}, {pipeline_mode = #tpu.pipeline_mode<synchronous>, transform_indices = @transform_4, window_bounds = array<i64: 16, 1>}, {transform_indices = @transform_5, window_bounds = array<i64: 1, 16, 256>}]} {
    %c0 = arith.constant 0 : index
    %c0_0 = arith.constant 0 : index
    %c0_1 = arith.constant 0 : index
    %0 = vector.load %arg1[%c0, %c0_0, %c0_1] : memref<1x16x256xf32, #tpu.memory_space<vmem>>, vector<1x16x256xf32>
    %1 = vector.shape_cast %0 : vector<1x16x256xf32> to vector<16x256xf32>
    %cst = arith.constant dense<0.000000e+00> : vector<16xf32>
    %2 = vector.multi_reduction <add>, %1, %cst [1] : vector<16x256xf32> to vector<16xf32>
    %3 = vector.shape_cast %2 : vector<16xf32> to vector<16x1xf32>
    %cst_2 = arith.constant 3.906250e-03 : f32
    %4 = vector.broadcast %cst_2 : f32 to vector<16x1xf32>
    %5 = arith.mulf %3, %4 : vector<16x1xf32>
    %c0_3 = arith.constant 0 : index
    %c0_4 = arith.constant 0 : index
    %6 = vector.load %arg2[%c0_3, %c0_4] : memref<16x4xf32, #tpu.memory_space<vmem>>, vector<16x4xf32>
    %7 = vector.broadcast %5 : vector<16x1xf32> to vector<16x4xf32>
    %8 = arith.mulf %6, %7 : vector<16x4xf32>
    %cst_5 = arith.constant dense<0.000000e+00> : vector<4xf32>
    %9 = vector.multi_reduction <add>, %8, %cst_5 [0] : vector<16x4xf32> to vector<4xf32>
    %10 = vector.shape_cast %9 : vector<4xf32> to vector<1x4xf32>
    %c0_6 = arith.constant 0 : index
    %c0_7 = arith.constant 0 : index
    %11 = vector.load %arg3[%c0_6, %c0_7] : memref<1x4xf32, #tpu.memory_space<vmem>>, vector<1x4xf32>
    %12 = arith.addf %10, %11 : vector<1x4xf32>
    %cst_8 = arith.constant 0.000000e+00 : f32
    %13 = vector.broadcast %cst_8 : f32 to vector<1x4xf32>
    %14 = arith.maximumf %12, %13 : vector<1x4xf32>
    %c0_9 = arith.constant 0 : index
    %c0_10 = arith.constant 0 : index
    %15 = vector.load %arg4[%c0_9, %c0_10] : memref<16x4xf32, #tpu.memory_space<vmem>>, vector<16x4xf32>
    %16 = vector.broadcast %14 : vector<1x4xf32> to vector<16x4xf32>
    %17 = arith.mulf %15, %16 : vector<16x4xf32>
    %cst_11 = arith.constant dense<0.000000e+00> : vector<16xf32>
    %18 = vector.multi_reduction <add>, %17, %cst_11 [1] : vector<16x4xf32> to vector<16xf32>
    %19 = vector.shape_cast %18 : vector<16xf32> to vector<16x1xf32>
    %c0_12 = arith.constant 0 : index
    %c0_13 = arith.constant 0 : index
    %20 = vector.load %arg5[%c0_12, %c0_13] : memref<16x1xf32, #tpu.memory_space<vmem>>, vector<16x1xf32>
    %21 = arith.addf %19, %20 : vector<16x1xf32>
    %cst_14 = arith.constant 0.000000e+00 : f32
    %22 = vector.broadcast %cst_14 : f32 to vector<16x1xf32>
    %23 = arith.subf %22, %21 : vector<16x1xf32>
    %24 = math.exp %23 : vector<16x1xf32>
    %cst_15 = arith.constant 1.000000e+00 : f32
    %25 = vector.broadcast %cst_15 : f32 to vector<16x1xf32>
    %26 = arith.addf %25, %24 : vector<16x1xf32>
    %27 = tpu.reciprocal %26 {approx = true} : vector<16x1xf32> -> vector<16x1xf32>
    %28 = arith.mulf %21, %27 : vector<16x1xf32>
    %c0_16 = arith.constant 0 : index
    %c0_17 = arith.constant 0 : index
    %c0_18 = arith.constant 0 : index
    %29 = vector.load %arg1[%c0_16, %c0_17, %c0_18] : memref<1x16x256xf32, #tpu.memory_space<vmem>>, vector<1x16x256xf32>
    %30 = vector.shape_cast %29 : vector<1x16x256xf32> to vector<16x256xf32>
    %31 = vector.broadcast %28 : vector<16x1xf32> to vector<16x256xf32>
    %32 = arith.mulf %30, %31 : vector<16x256xf32>
    %c0_19 = arith.constant 0 : index
    %c0_20 = arith.constant 0 : index
    %c0_21 = arith.constant 0 : index
    %33 = vector.load %arg6[%c0_19, %c0_20, %c0_21] : memref<1x16x256xf32, #tpu.memory_space<vmem>>, vector<1x16x256xf32>
    %34 = vector.shape_cast %33 : vector<1x16x256xf32> to vector<16x256xf32>
    %35 = vector.shape_cast %32 : vector<16x256xf32> to vector<1x16x256xf32>
    tpu.vector_store %arg6[%c0_19, %c0_20, %c0_21], %35 {strides = array<i32>} : memref<1x16x256xf32, #tpu.memory_space<vmem>>, vector<1x16x256xf32>,
    return
  }
  func.func @transform_0(%arg0: i32) -> (i32, i32, i32) {
    %c0_i32 = arith.constant 0 : i32
    %c0_i32_0 = arith.constant 0 : i32
    %c0_i32_1 = arith.constant 0 : i32
    return %arg0, %c0_i32, %c0_i32_0 : i32, i32, i32
  }
  func.func @transform_1(%arg0: i32) -> (i32, i32) {
    %c0_i32 = arith.constant 0 : i32
    %c0_i32_0 = arith.constant 0 : i32
    %c0_i32_1 = arith.constant 0 : i32
    return %c0_i32, %c0_i32_0 : i32, i32
  }
  func.func @transform_2(%arg0: i32) -> (i32, i32) {
    %c0_i32 = arith.constant 0 : i32
    %c0_i32_0 = arith.constant 0 : i32
    %c0_i32_1 = arith.constant 0 : i32
    return %c0_i32, %c0_i32_0 : i32, i32
  }
  func.func @transform_3(%arg0: i32) -> (i32, i32) {
    %c0_i32 = arith.constant 0 : i32
    %c0_i32_0 = arith.constant 0 : i32
    %c0_i32_1 = arith.constant 0 : i32
    return %c0_i32, %c0_i32_0 : i32, i32
  }
  func.func @transform_4(%arg0: i32) -> (i32, i32) {
    %c0_i32 = arith.constant 0 : i32
    %c0_i32_0 = arith.constant 0 : i32
    %c0_i32_1 = arith.constant 0 : i32
    return %c0_i32, %c0_i32_0 : i32, i32
  }
  func.func @transform_5(%arg0: i32) -> (i32, i32, i32) {
    %c0_i32 = arith.constant 0 : i32
    %c0_i32_0 = arith.constant 0 : i32
    %c0_i32_1 = arith.constant 0 : i32
    return %arg0, %c0_i32, %c0_i32_0 : i32, i32, i32
  }
}

</mosaic_0001>

<bundles_post_ra>
// kernel: tpu_custom_call.1
= control target key start
LH: loop header
LB: loop body
LE: loop exit
PB: predicated region body
PF: predicated region fallthrough
CT: control target
= control target key end

     0   :  { %10 = vsyncpa [#allocation3], 0  ;;  %s826_s0 = inlined_call_operand.hbm [shape: f32[2,16,256], index: 0, kind: input, shape index: {}]   ;;  %s827_s1 = inlined_call_operand.vmem [shape: f32[16,4], index: 1, kind: input, shape index: {}]   ;;  %s828_s2 = inlined_call_operand.vmem [shape: f32[1,4], index: 2, kind: input, shape index: {}]   ;;  %s829_s3 = inlined_call_operand.vmem [shape: f32[16,4], index: 3, kind: input, shape index: {}]   ;;  %s830_s4 = inlined_call_operand.vmem [shape: f32[16,1], index: 4, kind: input, shape index: {}]   ;;  %s831_s5 = inlined_call_operand.hbm [shape: f32[2,16,256], index: 5, kind: output, shape index: {}]  }
   0x1   :  { %12 = vsyncpa [#allocation3 + $0x1], 0 }
   0x2   :  { %13 = vsyncpa [#allocation4], 0 }
   0x3   :  { %15 = vsyncpa [#allocation4 + $0x1], 0  ;;  %s619_s18 = smov 0   ;;  %s621_s19 = smov 0  }
   0x4   :  { %s623_s20 = smov 0   ;;  %s625_s21 = smov 0  }
   0x5 LB: > { %s640_s22 = sadd.s32 4294967295, %s580_s21   ;;  %s407_s23 = sadd.s32 4294967294, %s580_s21   ;;  %s580_s21 = sphi %s625_s21, %s844_s21   ;;  %s576_s20 = sphi %s623_s20, %s843_s20   ;;  %s572_s19 = sphi %s621_s19, %s842_s19   ;;  %s568_s18 = sphi %s619_s18, %s841_s18  }
   0x6   : > { %s644_s24 = sadd.s32 1, %s580_s21   ;;  %s28_s25 = sadd.s32 1, %s576_s20 }
   0x7   : > { %s25_s26 = ssub.s32 %s580_s21, %s644_s24  ;;  %p35_p0 = scmp.ne.s32.totalorder %s576_s20, %s572_s19 }
   0x8   : > { %p26_p1 = scmp.eq.s32.totalorder %s25_s26, 0  ;;  %p36_p2 = scmp.eq.s32.totalorder %s580_s21, 0 }
   0x9   : > { %p41_p3 = scmp.ne.s32.totalorder %s572_s19, %s568_s18  ;;  %p42_p4 = scmp.eq.s32.totalorder %s640_s22, 0 }
   0xa   : > { %s656_s27 = scalar_select %p26_p1, %s576_s20, %s28_s25  }
   0xb   : > { %p658_p5 = por %p36_p2, %p35_p0  ;;  %p662_p6 = por %p42_p4, %p41_p3 }
   0xc   : > { %p149_p7 = scmp.eq.s32.totalorder %s640_s22, 1  ;;  %p155_p8 = scmp.eq.s32.totalorder %s407_s23, 1 }
   0xd   : > { %p435_p10 = scmp.lt.s32.totalorder %s580_s21, 2  ;;  %s187_s7 = sand.u32 1, %s576_s20  }
   0xe   : > { %p669_p11 = por %p149_p7, %p35_p0  ;;  %p673_p12 = por %p155_p8, %p41_p3 }
   0xf   : > { %s421_s8 = sshll.u32 %s580_s21, 9  ;;  %s410_s9 = sshll.u32 %s187_s7, 5 }
  0x10   : > { %s835_s30 = scalar_select %p669_p11, 1, 0 }
  0x11   : > { %s836_s6 = scalar_select %p673_p12, 1, 0 }
  0x12   : > { %s682_s12 = scalar_lea.hbm %s826_s0, %s421_s8  ;;  %s191_s13 = scalar_lea.vmem [#allocation2], %s410_s9 }
  0x13   : > { %s198_s14 = sshll.u32 %s191_s13, 4  ;;  %p686_p13 = pnand %p435_p10, %p658_p5  ;;  %s690_s14 = int_to_ptr.vmem [resolvable:$true] %s198_s14 }
  0x14   : > { %s692_s16 = scalar_lea.sflag [#allocation3], %s187_s7  ;;  %s484_s17 = scalar_lea.hbm %s682_s12, 512 }
  0x15   : > { %p485_p0 = scmp.ne.s32.totalorder %s682_s12, %s484_s17  ;;  %p486_p1 = pneg %p686_p13 }
  0x16   : > { %s489_s26 = scalar_lea.hbm %s826_s0, 1024  ;;  %p490_p4 = scmp.lt.u32.totalorder %s682_s12, %s826_s0 }
  0x17   : > { %p487_p2 = pnand %p486_p1, %p485_p0  ;;  %p491_p5 = scmp.lt.u32.totalorder %s489_s26, %s484_s17 }
  0x18   : > { %p493_p8 = scmp.lt.u32.totalorder %s484_s17, %s682_s12 }
  0x19   : > { %p488_p3 = pneg %p487_p2  ;;  %p492_p7 = por %p491_p5, %p490_p4 }
  0x1b   : > { %p494_p10 = por %p493_p8, %p492_p7 }
  0x1d   : > { %p495_p9 = pnand %p494_p10, %p488_p3 }
  0x1f   : > { %498 = shalt.err (!%p495_p9)
}
  0x20   : > { %s499_s7 = scalar_lea.vmem %s690_s14, 512  ;;  %s582_s9 = smov [#allocation2]  }
  0x21   : > { %p500_p0 = scmp.ne.s32.totalorder %s690_s14, %s499_s7  ;;  %s504_s10 = sshll.u32 %s582_s9, 4  ;;  %s505_s10 = int_to_ptr.vmem [resolvable:$false] %s504_s10 }
  0x22   : > { %s506_s11 = scalar_lea.vmem %s505_s10, 1024  ;;  %p507_p11 = scmp.lt.s32.totalorder %s690_s14, %s505_s10 }
  0x23   : > { %p502_p2 = pnand %p500_p0, %p486_p1  ;;  %p508_p4 = scmp.lt.s32.totalorder %s506_s11, %s499_s7 }
  0x25   : > { %p503_p12 = pneg %p502_p2  ;;  %p509_p5 = por %p508_p4, %p507_p11 }
  0x27   : > { %p510_p7 = pnand %p509_p5, %p503_p12 }
  0x29   : > { %513 = shalt.err (!%p510_p7)
}
  0x2a   : > { %s583_s13 = smov 256   ;;  %s584_s17 = smov 16  }
  0x2b   : > { %430 = dma.hbm_to_vmem [thread:$0]  (!%p686_p13), %s682_s12, 512, %s690_s14, %s692_s16, %s583_s13, %s583_s13, %s584_s17  }
  0x2c   : > { %p413_p9 = scmp.ge.s32.totalorder %s580_s21, 1  ;;  %p206_p1 = scmp.lt.s32.totalorder %s580_s21, 3 }
  0x2e   : > { %p207_p3 = pnand %p413_p9, %p206_p1 }
  0x2f   : > { %s723_s23 = sand.u32 (!%p207_p3), 1, %s572_s19  }
  0x30   : > { %210 = sbr.rel (%p207_p3) target bundleno = 556 (0x22c), region = 40  ;;  %s414_s25 = sshll.u32 (!%p207_p3), %s723_s23, 5 }
  0x31   : > { %s213_s26 = scalar_lea.sflag (!%p207_p3), [#allocation3], %s723_s23  ;;  %s216_s28 = scalar_lea.vmem (!%p207_p3), [#allocation2], %s414_s25 }
  0x37   : > { %559 = dma.done.wait (%p662_p6), %s213_s26, 512  }
  0x38   : > { %561 = vsyncadd (%p662_p6), %s213_s26, 4294966784  ;;  %v733_v0 = vld [vmem:[%s216_s28] sm:$0xff]  ;;  %v735_v1 = vld [vmem:[%s216_s28 + $0x8] sm:$0xff]  ;;  %vm259_vm0 = vcmask 31744   ;;  %v274_v20 = vlaneseq  ;;  %v585_v36 = vmov 0   ;;  %s242_s29 = scalar_lea.vmem [#allocation5], %s414_s25 }
  0x39   : > { %v737_v2 = vld [vmem:[%s216_s28 + $0x10] sm:$0xff]  ;;  %v247_v3 = vadd.f32 %v735_v1, %v733_v0  ;;  %v741_v4 = vld [vmem:[%s216_s28 + $0x18] sm:$0xff]  ;;  %v255_v8 = vld [vmem:[%s827_s1] sm:$0xff]  ;;  %474 = vset.pattern.permute.xlu0 %v585_v36  ;;  %475 = vset.pattern.permute.xlu1 %v585_v36  ;;  %s334_s12 = sshll.u32 %s242_s29, 4  ;;  %s422_s14 = sshll.u32 %s640_s22, 9  ;;  %s775_s12 = int_to_ptr.vmem [resolvable:$true] %s334_s12 }
  0x3a   : > { %v250_v5 = vadd.f32 %v741_v4, %v737_v2  ;;  %v256_v9 = vld [vmem:[%s827_s1 + $0x8] sm:$0xff]  ;;  %v275_v23 = vshrl.u32 %v274_v20, 7  ;;  %v269_v24 = vld [vmem:[%s828_s2] sm:$0x1]  ;;  %s780_s25 = scalar_lea.hbm %s831_s5, %s422_s14  ;;  %s321_s22 = scalar_lea.sflag [#allocation4], %s723_s23 }
  0x3b   : > { %248 = vadd.xlane.f32.xlu0 %v247_v3  ;;  %v272_v29 = vld [vmem:[%s829_s3] sm:$0xff]  ;;  %v273_v31 = vld [vmem:[%s829_s3 + $0x8] sm:$0xff]  ;;  %s514_s8 = scalar_lea.vmem %s775_s12, 512  ;;  %p838_p11 = scmp.ne.s32.totalorder %s835_s30, 0 }
  0x3c   : > { %v276_v27 = vsub.s32 0, %v275_v23  ;;  %v286_v37 = vld [vmem:[%s830_s4] sm:$0xff]  ;;  %v287_v40 = vld [vmem:[%s830_s4 + $0x8] sm:$0xff]  ;;  %p515_p6 = scmp.ne.s32.totalorder %s775_s12, %s514_s8  ;;  %s586_s7 = smov [#allocation5]  }
  0x3d   : > { %s518_s9 = sshll.u32 %s586_s7, 4  ;;  %s519_s9 = int_to_ptr.vmem [resolvable:$false] %s518_s9 }
  0x3e   : > { %p516_p12 = pnand %p515_p6, %p838_p11  ;;  %s520_s10 = scalar_lea.vmem %s519_s9, 1024 }
  0x3f   : > { %251 = vadd.xlane.f32.xlu0 %v250_v5  ;;  %p521_p8 = scmp.lt.s32.totalorder %s775_s12, %s519_s9  ;;  %p522_p10 = scmp.lt.s32.totalorder %s520_s10, %s514_s8 }
  0x40   : > { %p517_p13 = pneg %p516_p12 }
  0x41   : > { %p523_p0 = por %p522_p10, %p521_p8 }
  0x43   : > { %p524_p2 = pnand %p523_p0, %p517_p13 }
  0xc8   : > { %v249_v6 = vpop.xlane.xlu0 %248 }
  0xc9   : > { %v253_v7 = vmul.f32 0.00390625, %v249_v6 }
  0xcb   : > { %v257_v11 = vmul.f32 %v255_v8, %v253_v7 }
  0xcc   : > { %v252_v10 = vpop.xlane.xlu0 %251 }
  0xcd   : > { %v254_v12 = vmul.f32 0.00390625, %v252_v10  ;;  %v260_v14 = vsel %vm259_vm0, %v257_v11, 0.0 }
  0xcf   : > { %v258_v13 = vmul.f32 %v256_v9, %v254_v12 }
  0xd1   : > { %v261_v15 = vsel %vm259_vm0, %v258_v13, 0.0 }
  0xd2   : > { %v262_v16 = vadd.f32 %v261_v15, %v260_v14 }
  0xd4   : > { %v263_v17 = vrot.slane %v262_v16, 4 }
  0xd6   : > { %v264_v18 = vadd.f32 %v263_v17, %v262_v16 }
  0xd8   : > { %v265_v19 = vrot.slane %v264_v18, 2 }
  0xda   : > { %v266_v21 = vadd.f32 %v265_v19, %v264_v18 }
  0xdc   : > { %v267_v22 = vrot.slane %v266_v21, 1 }
  0xde   : > { %v268_v25 = vadd.f32 %v267_v22, %v266_v21 }
  0xe0   : > { %v270_v26 = vadd.f32 %v269_v24, %v268_v25 }
  0xe2   : > { %v271_v28 = vmax.f32 %v270_v26, 0.0 }
  0xe4   : > { %v277_v30 = vrot.slane %v271_v28, %v276_v27 }
  0xe6   : > { %v278_v32 = vmul.f32 %v277_v30, %v272_v29  ;;  %v279_v34 = vmul.f32 %v277_v30, %v273_v31 }
  0xe8   : > { %v280_v33 = vsel %vm259_vm0, %v278_v32, 0.0  ;;  %v283_v35 = vsel %vm259_vm0, %v279_v34, 0.0 }
  0xe9   : > { %281 = vadd.xlane.f32.xlu1 %v280_v33 }
  0xed   : > { %284 = vadd.xlane.f32.xlu1 %v283_v35 }
 0x176   : > { %v282_v38 = vpop.xlane.xlu1 %281 }
 0x177   : > { %v288_v39 = vadd.f32 %v286_v37, %v282_v38 }
 0x179   : > { %v290_v41 = vsub.f32 0.0, %v288_v39 }
 0x17a   : > { %v285_v42 = vpop.xlane.xlu1 %284 }
 0x17b   : > { %v292_v43 = vmul.f32 1.442695, %v290_v41  ;;  %v289_v44 = vadd.f32 %v287_v40, %v285_v42 }
 0x17d   : > { %476 = vpow2.f32 %v292_v43  ;;  %v291_v45 = vsub.f32 0.0, %v289_v44 }
 0x17f   : > { %v294_v46 = vmul.f32 1.442695, %v291_v45 }
 0x181   : > { %478 = vpow2.f32 %v294_v46 }
 0x187   : > { %v477_v47 = vpop.eup %476 }
 0x188   : > { %v296_v48 = vadd.f32 1.0, %v477_v47 }
 0x18a   : > { %480 = vrcp.f32 %v296_v48 }
 0x18b   : > { %v479_v49 = vpop.eup %478 }
 0x18c   : > { %v297_v50 = vadd.f32 1.0, %v479_v49 }
 0x18e   : > { %482 = vrcp.f32 %v297_v50 }
 0x194   : > { %v481_v51 = vpop.eup %480 }
 0x195   : > { %v300_v52 = vmul.f32 %v481_v51, %v288_v39 }
 0x197   : > { %304 = vperm.xlu0 %474, %v300_v52  }
 0x198   : > { %v483_v53 = vpop.eup %482 }
 0x199   : > { %v301_v54 = vmul.f32 %v483_v53, %v289_v44 }
 0x19b   : > { %309 = vperm.xlu1 %475, %v301_v54  }
 0x216   : > { %v305_v55 = vpop.permute.xlu0 %304 }
 0x217   : > { %v312_v56 = vmul.f32 %v305_v55, %v733_v0  ;;  %v313_v57 = vmul.f32 %v305_v55, %v735_v1 }
 0x219   : > { %316 = vst [vmem:[%s242_s29] sm:$0xff] %v312_v56  ;;  %317 = vst [vmem:[%s242_s29 + $0x8] sm:$0xff] %v313_v57 }
 0x21a   : > { %v310_v58 = vpop.permute.xlu1 %309 }
 0x21b   : > { %v314_v59 = vmul.f32 %v310_v58, %v737_v2  ;;  %v315_v60 = vmul.f32 %v310_v58, %v741_v4 }
 0x21d   : > { %318 = vst [vmem:[%s242_s29 + $0x10] sm:$0xff] %v314_v59  ;;  %319 = vst [vmem:[%s242_s29 + $0x18] sm:$0xff] %v315_v60 }
 0x21e   : > { %527 = shalt.err (!%p524_p2)
}
 0x21f   : > { %s528_s11 = scalar_lea.hbm %s780_s25, 512  ;;  %s532_s26 = scalar_lea.hbm %s831_s5, 1024 }
 0x220   : > { %p529_p4 = scmp.ne.s32.totalorder %s780_s25, %s528_s11  ;;  %p533_p9 = scmp.lt.u32.totalorder %s780_s25, %s831_s5 }
 0x221   : > { %p534_p1 = scmp.lt.u32.totalorder %s532_s26, %s528_s11  ;;  %p536_p6 = scmp.lt.u32.totalorder %s528_s11, %s780_s25 }
 0x222   : > { %p530_p5 = pnand %p529_p4, %p838_p11 }
 0x223   : > { %p535_p3 = por %p534_p1, %p533_p9 }
 0x224   : > { %p531_p7 = pneg %p530_p5 }
 0x225   : > { %p537_p12 = por %p536_p6, %p535_p3 }
 0x227   : > { %p538_p13 = pnand %p537_p12, %p531_p7 }
 0x229   : > { %541 = shalt.err (!%p538_p13)
}
 0x22a   : > { %s587_s14 = smov 256   ;;  %s588_s15 = smov 16  }
 0x22b   : > { %425 = dma.vmem_to_hbm [thread:$0]  (%p838_p11), %s775_s12, 512, %s780_s25, %s321_s22, %s587_s14, %s587_s14, %s588_s15  }
 0x22c PF: > { %s349_s16 = sand.u32 1, %s568_s18   ;;  %p839_p8 = scmp.ne.s32.totalorder %s836_s6, 0 }
 0x22d   : > { %p840_p10 = scmp.ge.s32.totalorder %s580_s21, 2  ;;  %s350_s8 = scalar_lea.sflag [#allocation4], %s349_s16 }
 0x22f   : > { %p432_p0 = pnand %p840_p10, %p839_p8 }
 0x231   : > { %563 = dma.done.wait (!%p432_p0), %s350_s8, 512  }
 0x232   : > { %565 = vsyncadd (!%p432_p0), %s350_s8, 4294966784  ;;  %p18_p2 = scmp.ge.s32.totalorder %s644_s24, 4   ;;  %s841_s18 = smov %s572_s19 }
 0x233   : > { %s842_s19 = smov %s576_s20  ;;  %s843_s20 = smov %s656_s27 }
 0x234   : > { %s844_s21 = smov %s644_s24  ;;  %20 = sbr.rel (!%p18_p2) target bundleno = 5 (0x5), region = 85 }
 0x23b   :  { %355 = vsyncpa [#allocation3], 1 }
 0x23c   :  { %357 = vsyncpa [#allocation3 + $0x1], 1 }
 0x23d   :  { %358 = vsyncpa [#allocation4], 1 }
 0x23e   :  { %360 = vsyncpa [#allocation4 + $0x1], 1 }

</bundles_post_ra>
